<compile_context>
chip_gen: v6e
topology: v6e:2x2x1
jax: 0.10.0
libtpu: 0.0.40
codegen_flags: <defaults>
</compile_context>

<pallas_src>
import jax
import jax.numpy as jnp
from jax.experimental import pallas as pl
from jax.experimental.pallas import tpu as pltpu


def _fused_kernel(x1_ref, v1_ref, v5_ref, u7_ref, x10_ref, x11_ref, x12_ref):
    """One (1, S, D) batch block resident in VMEM: elementwise chain + one sublane-max
    reduction; one whole-block store per output."""
    x1 = x1_ref[...]                                   # (1, S, D)
    v1 = v1_ref[...]                                   # torch.rand_like(x1)
    # TODO(synk): torch.rand_like(i3) on an int64 tensor raises in torch; drawn as f32.
    v5 = v5_ref[...]
    # TODO(synk): stands in for rand_like(x7.permute(0,2,1)); the original x7 chain is
    # shape-inconsistent (would raise) and only its shape feeds this rand_like.
    u7 = u7_ref[...]

    # x3, i3 = max(x1.unsqueeze(1), dim=1) -> x3 == x1 (i3 == 0 is dead downstream).
    x3 = x1
    # x6, i6 = max(v5, dim=1); feeds the extra concat row.
    x6 = jnp.max(v5, axis=1, keepdims=True)            # (1, 1, D)
    # x8 = x1 + v7 ; x9 = sigmoid(x8)
    x9 = jax.nn.sigmoid(x1 + u7)                       # (1, S, D)
    # v10 = v1 * x10 ; x11 = x9 * v10   (leading-S-rows interpretation, see header)
    x11u = x9 * (v1 * x3)                              # (1, S, D)

    # x10 = cat([x3, x5], dim=1).  TODO(synk): the torch cat is ill-formed
    # ((B,S,D) vs (B,D,1)); we append the max-reduced row x6 as one extra row.
    x10_ref[...] = jnp.concatenate([x3, x6], axis=1)   # (1, S+1, D), single store
    # x11 stored lane-dense (unpermuted); the jitted wrapper applies permute(0,2,1).
    x11_ref[...] = x11u
    # x12 = x10 + v11   (v11 == unpermuted x11, zero on the extra row)
    x12_ref[...] = jnp.concatenate([x3 + x11u, x6], axis=1)


def _call_fused(x1, v1, v5, u7):
    B, S, D = x1.shape
    S1 = S + 1
    spec_sd = pl.BlockSpec((1, S, D), lambda b: (b, 0, 0))
    spec_s1d = pl.BlockSpec((1, S1, D), lambda b: (b, 0, 0))
    return pl.pallas_call(
        _fused_kernel,
        out_shape=(
            jax.ShapeDtypeStruct((B, S1, D), jnp.float32),   # x10
            jax.ShapeDtypeStruct((B, S, D), jnp.float32),    # x11 (unpermuted, lane-dense)
            jax.ShapeDtypeStruct((B, S1, D), jnp.float32),   # x12
        ),
        grid=(B,),
        in_specs=[spec_sd, spec_sd, spec_sd, spec_sd],
        out_specs=(spec_s1d, spec_sd, spec_s1d),
        compiler_params=pltpu.CompilerParams(
            dimension_semantics=("parallel",)),
    )(x1, v1, v5, u7)


def _draw_randoms(key, shape):
    k1, k5, k7 = jax.random.split(key, 3)
    v1 = jax.random.uniform(k1, shape, jnp.float32)
    v5 = jax.random.uniform(k5, shape, jnp.float32)
    u7 = jax.random.uniform(k7, shape, jnp.float32)
    return v1, v5, u7


@jax.jit
def model_forward(x1, key):
    """Returns (x10, x11, x12).  RNG draws, the Pallas kernel, and the x11 permute are
    all compiled/cached in one jit; the caller decides when to block."""
    v1, v5, u7 = _draw_randoms(key, x1.shape)
    x10, x11u, x12 = _call_fused(x1, v1, v5, u7)
    x11 = jnp.transpose(x11u, (0, 2, 1))               # permute(0, 2, 1), fused by XLA
    return x10, x11, x12


def _reference(x1, key):
    """Pure-JAX (XLA) reference of the live dataflow, for the self-check."""
    v1, v5, u7 = _draw_randoms(key, x1.shape)
    x3 = x1
    x6 = jnp.max(v5, axis=1, keepdims=True)
    x10 = jnp.concatenate([x3, x6], axis=1)
    x9 = jax.nn.sigmoid(x1 + u7)
    x11u = x9 * (v1 * x3)
    x11 = jnp.transpose(x11u, (0, 2, 1))
    x12 = x10 + jnp.concatenate([x11u, jnp.zeros_like(x6)], axis=1)
    return x10, x11, x12


if __name__ == "__main__":
    key = jax.random.PRNGKey(0)
    kx, kr = jax.random.split(key)
    x1 = jax.random.normal(kx, (1, 2, 4), jnp.float32)   # matches the torch module

    x10, x11, x12 = jax.block_until_ready(model_forward(x1, kr))
    assert x10.shape == (1, 3, 4) and x11.shape == (1, 4, 2) and x12.shape == (1, 3, 4)
    r10, r11, r12 = _reference(x1, kr)
    assert jnp.allclose(x10, r10, atol=1e-5)
    assert jnp.allclose(x11, r11, atol=1e-5)
    assert jnp.allclose(x12, r12, atol=1e-5)

    # Batched path: exercises the B-grid (shards across TensorCores on v7x).
    kx2, kr2 = jax.random.split(kr)
    xb = jax.random.normal(kx2, (4, 2, 4), jnp.float32)
    yb = jax.block_until_ready(model_forward(xb, kr2))
    rb = _reference(xb, kr2)
    assert yb[0].shape == (4, 3, 4) and yb[1].shape == (4, 4, 2) and yb[2].shape == (4, 3, 4)
    for y, r in zip(yb, rb):
        assert jnp.allclose(y, r, atol=1e-5)

    print("KERNEL_OK")
</pallas_src>

<mosaic_0001>
module attributes {stable_mosaic.version = 11 : i64} {
  func.func @_fused_kernel(%arg0: i32, %arg1: memref<1x2x4xf32, #tpu.memory_space<vmem>>, %arg2: memref<1x2x4xf32, #tpu.memory_space<vmem>>, %arg3: memref<1x2x4xf32, #tpu.memory_space<vmem>>, %arg4: memref<1x2x4xf32, #tpu.memory_space<vmem>>, %arg5: memref<1x3x4xf32, #tpu.memory_space<vmem>>, %arg6: memref<1x2x4xf32, #tpu.memory_space<vmem>>, %arg7: memref<1x3x4xf32, #tpu.memory_space<vmem>>) attributes {dimension_semantics = [#tpu.dimension_semantics<parallel>], iteration_bounds = array<i64: 1>, scalar_prefetch = 0 : i64, scratch_operands = 0 : i64, tpu.core_type = #tpu.core_type<tc>, window_params = [{transform_indices = @transform_0, window_bounds = array<i64: 1, 2, 4>}, {transform_indices = @transform_1, window_bounds = array<i64: 1, 2, 4>}, {transform_indices = @transform_2, window_bounds = array<i64: 1, 2, 4>}, {transform_indices = @transform_3, window_bounds = array<i64: 1, 2, 4>}, {transform_indices = @transform_4, window_bounds = array<i64: 1, 3, 4>}, {transform_indices = @transform_5, window_bounds = array<i64: 1, 2, 4>}, {transform_indices = @transform_6, window_bounds = array<i64: 1, 3, 4>}]} {
    %c0 = arith.constant 0 : index
    %c0_0 = arith.constant 0 : index
    %c0_1 = arith.constant 0 : index
    %0 = vector.load %arg1[%c0, %c0_0, %c0_1] : memref<1x2x4xf32, #tpu.memory_space<vmem>>, vector<1x2x4xf32>
    %c0_2 = arith.constant 0 : index
    %c0_3 = arith.constant 0 : index
    %c0_4 = arith.constant 0 : index
    %1 = vector.load %arg2[%c0_2, %c0_3, %c0_4] : memref<1x2x4xf32, #tpu.memory_space<vmem>>, vector<1x2x4xf32>
    %c0_5 = arith.constant 0 : index
    %c0_6 = arith.constant 0 : index
    %c0_7 = arith.constant 0 : index
    %2 = vector.load %arg3[%c0_5, %c0_6, %c0_7] : memref<1x2x4xf32, #tpu.memory_space<vmem>>, vector<1x2x4xf32>
    %c0_8 = arith.constant 0 : index
    %c0_9 = arith.constant 0 : index
    %c0_10 = arith.constant 0 : index
    %3 = vector.load %arg4[%c0_8, %c0_9, %c0_10] : memref<1x2x4xf32, #tpu.memory_space<vmem>>, vector<1x2x4xf32>
    %cst = arith.constant dense<0xFF800000> : vector<1x4xf32>
    %4 = vector.multi_reduction <maximumf>, %2, %cst [1] : vector<1x2x4xf32> to vector<1x4xf32>
    %5 = vector.shape_cast %4 : vector<1x4xf32> to vector<1x1x4xf32>
    %6 = arith.addf %0, %3 : vector<1x2x4xf32>
    %7 = arith.negf %6 : vector<1x2x4xf32>
    %8 = math.exp %7 : vector<1x2x4xf32>
    %cst_11 = arith.constant 1.000000e+00 : f32
    %9 = vector.broadcast %cst_11 : f32 to vector<1x2x4xf32>
    %10 = arith.addf %9, %8 : vector<1x2x4xf32>
    %11 = arith.divf %9, %10 : vector<1x2x4xf32>
    %12 = arith.mulf %1, %0 : vector<1x2x4xf32>
    %13 = arith.mulf %11, %12 : vector<1x2x4xf32>
    %14 = tpu.concatenate %0, %5 in 1 : vector<1x2x4xf32>, vector<1x1x4xf32> -> vector<1x3x4xf32>
    %c0_12 = arith.constant 0 : index
    %c0_13 = arith.constant 0 : index
    %c0_14 = arith.constant 0 : index
    %15 = vector.load %arg5[%c0_12, %c0_13, %c0_14] : memref<1x3x4xf32, #tpu.memory_space<vmem>>, vector<1x3x4xf32>
    tpu.vector_store %arg5[%c0_12, %c0_13, %c0_14], %14 {strides = array<i32>} : memref<1x3x4xf32, #tpu.memory_space<vmem>>, vector<1x3x4xf32>,
    %c0_15 = arith.constant 0 : index
    %c0_16 = arith.constant 0 : index
    %c0_17 = arith.constant 0 : index
    %16 = vector.load %arg6[%c0_15, %c0_16, %c0_17] : memref<1x2x4xf32, #tpu.memory_space<vmem>>, vector<1x2x4xf32>
    tpu.vector_store %arg6[%c0_15, %c0_16, %c0_17], %13 {strides = array<i32>} : memref<1x2x4xf32, #tpu.memory_space<vmem>>, vector<1x2x4xf32>,
    %17 = arith.addf %0, %13 : vector<1x2x4xf32>
    %18 = tpu.concatenate %17, %5 in 1 : vector<1x2x4xf32>, vector<1x1x4xf32> -> vector<1x3x4xf32>
    %c0_18 = arith.constant 0 : index
    %c0_19 = arith.constant 0 : index
    %c0_20 = arith.constant 0 : index
    %19 = vector.load %arg7[%c0_18, %c0_19, %c0_20] : memref<1x3x4xf32, #tpu.memory_space<vmem>>, vector<1x3x4xf32>
    tpu.vector_store %arg7[%c0_18, %c0_19, %c0_20], %18 {strides = array<i32>} : memref<1x3x4xf32, #tpu.memory_space<vmem>>, vector<1x3x4xf32>,
    return
  }
  func.func @transform_0(%arg0: i32) -> (i32, i32, i32) {
    %c0_i32 = arith.constant 0 : i32
    %c0_i32_0 = arith.constant 0 : i32
    %c0_i32_1 = arith.constant 0 : i32
    return %arg0, %c0_i32, %c0_i32_0 : i32, i32, i32
  }
  func.func @transform_1(%arg0: i32) -> (i32, i32, i32) {
    %c0_i32 = arith.constant 0 : i32
    %c0_i32_0 = arith.constant 0 : i32
    %c0_i32_1 = arith.constant 0 : i32
    return %arg0, %c0_i32, %c0_i32_0 : i32, i32, i32
  }
  func.func @transform_2(%arg0: i32) -> (i32, i32, i32) {
    %c0_i32 = arith.constant 0 : i32
    %c0_i32_0 = arith.constant 0 : i32
    %c0_i32_1 = arith.constant 0 : i32
    return %arg0, %c0_i32, %c0_i32_0 : i32, i32, i32
  }
  func.func @transform_3(%arg0: i32) -> (i32, i32, i32) {
    %c0_i32 = arith.constant 0 : i32
    %c0_i32_0 = arith.constant 0 : i32
    %c0_i32_1 = arith.constant 0 : i32
    return %arg0, %c0_i32, %c0_i32_0 : i32, i32, i32
  }
  func.func @transform_4(%arg0: i32) -> (i32, i32, i32) {
    %c0_i32 = arith.constant 0 : i32
    %c0_i32_0 = arith.constant 0 : i32
    %c0_i32_1 = arith.constant 0 : i32
    return %arg0, %c0_i32, %c0_i32_0 : i32, i32, i32
  }
  func.func @transform_5(%arg0: i32) -> (i32, i32, i32) {
    %c0_i32 = arith.constant 0 : i32
    %c0_i32_0 = arith.constant 0 : i32
    %c0_i32_1 = arith.constant 0 : i32
    return %arg0, %c0_i32, %c0_i32_0 : i32, i32, i32
  }
  func.func @transform_6(%arg0: i32) -> (i32, i32, i32) {
    %c0_i32 = arith.constant 0 : i32
    %c0_i32_0 = arith.constant 0 : i32
    %c0_i32_1 = arith.constant 0 : i32
    return %arg0, %c0_i32, %c0_i32_0 : i32, i32, i32
  }
}

</mosaic_0001>

<bundles_post_ra>
// kernel: model_forward.1
= control target key start
LH: loop header
LB: loop body
LE: loop exit
PB: predicated region body
PF: predicated region fallthrough
CT: control target
= control target key end

     0   :  { %vm25_vm0 = vcmask 25600   ;;  %s163_s0 = inlined_call_operand.vmem [shape: f32[1,2,4], index: 0, kind: input, shape index: {}]   ;;  %s164_s1 = inlined_call_operand.vmem [shape: f32[1,2,4], index: 1, kind: input, shape index: {}]   ;;  %s165_s2 = inlined_call_operand.vmem [shape: f32[1,2,4], index: 2, kind: input, shape index: {}]   ;;  %s166_s3 = inlined_call_operand.vmem [shape: f32[1,2,4], index: 3, kind: input, shape index: {}]   ;;  %s167_s4 = inlined_call_operand.vmem [shape: f32[1,3,4], index: 4, kind: output, shape index: {0}]   ;;  %s168_s5 = inlined_call_operand.hbm [shape: f32[1,2,4], index: 5, kind: output, shape index: {1}]   ;;  %s169_s6 = inlined_call_operand.vmem [shape: f32[1,3,4], index: 6, kind: output, shape index: {2}]  }
   0x1   :  { %v21_v0 = vld [vmem:[%s163_s0] sm:$0x3] }
   0x2   :  { %v23_v1 = vld [vmem:[%s165_s2] sm:$0x3] }
   0x3   :  { %v24_v2 = vld [vmem:[%s166_s3] sm:$0x3]  ;;  %v26_v3 = vsel %vm25_vm0, %v23_v1, -inf }
   0x4   :  { %v33_v4 = vadd.f32 %v24_v2, %v21_v0 }
   0x5   :  { %12 = vsyncpa [#allocation3], 0  ;;  %v27_v5 = vrot.slane %v26_v3, 4  ;;  %vm42_vm1 = vcmask 1041408   ;;  %vm44_vm2 = vcmask 26624   ;;  %s100_s28 = smov [#allocation2]  }
   0x6   :  { %v72_v6 = vmul.f32 -1.442695, %v33_v4  ;;  %v22_v15 = vld [vmem:[%s164_s1] sm:$0x3]  ;;  %s58_s29 = sshll.u32 %s100_s28, 4  ;;  %s59_s29 = int_to_ptr.vmem [resolvable:$true] %s58_s29 }
   0x7   :  { %v28_v7 = vmax.f32 %v26_v3, %v27_v5  ;;  %v40_v16 = vmul.f32 %v22_v15, %v21_v0  ;;  %s78_s30 = scalar_lea.vmem %s59_s29, 32  ;;  %p83_p1 = scmp.lt.s32.totalorder %s59_s29, %s59_s29 }
   0x8   :  { %74 = vpow2.f32 %v72_v6  ;;  %p79_p0 = scmp.ne.s32.totalorder %s59_s29, %s78_s30  ;;  %p84_p2 = scmp.lt.s32.totalorder %s78_s30, %s78_s30 }
   0x9   :  { %v29_v8 = vrot.slane %v28_v7, 2 }
   0xa   :  { %p85_p3 = por %p84_p2, %p83_p1 }
   0xb   :  { %v30_v9 = vmax.f32 %v28_v7, %v29_v8 }
   0xc   :  { %p86_p4 = pnand %p85_p3, %p79_p0 }
   0xd   :  { %v31_v10 = vrot.slane %v30_v9, 1 }
   0xf   :  { %v32_v11 = vmax.f32 %v30_v9, %v31_v10 }
  0x11   :  { %v43_v12 = vsel %vm42_vm1, %v21_v0, %v32_v11 }
  0x12   :  { %45 = vst.msk [vmem:[%s167_s4] sm:$0x7] %vm44_vm2, %v43_v12 }
  0x15   :  { %v75_v13 = vpop.eup %74 }
  0x16   :  { %v37_v14 = vadd.f32 1.0, %v75_v13 }
  0x18   :  { %76 = vrcp.f32 %v37_v14 }
  0x25   :  { %v77_v17 = vpop.eup %76 }
  0x26   :  { %v41_v18 = vmul.f32 %v77_v17, %v40_v16 }
  0x28   :  { %46 = vst.msk [vmem:[#allocation2] sm:$0x3] %vm25_vm0, %v41_v18  ;;  %v47_v19 = vadd.f32 %v41_v18, %v21_v0 }
  0x29   :  { %89 = shalt.err (!%p86_p4)
}
  0x2a   :  { %61 = dma.vmem_to_hbm [thread:$0]  %s59_s29, 32, %s168_s5, [#allocation3]   ;;  %v48_v20 = vsel %vm42_vm1, %v47_v19, %v32_v11 }
  0x2b   :  { %49 = vst.msk [vmem:[%s169_s6] sm:$0x7] %vm44_vm2, %v48_v20 }
  0x2c   :  { %98 = dma.done.wait [#allocation3], 32  }
  0x2d   :  { %99 = vsyncadd [#allocation3], 4294967264 }
  0x2e   :  { %71 = vsyncpa [#allocation3], 1 }

</bundles_post_ra>
